<compile_context>
chip_gen: v7x
topology: tpu7x:2x2x1
jax: 0.10.0
libtpu: 0.0.40
codegen_flags: <defaults>
</compile_context>

<pallas_src>
import functools

import jax
import jax.numpy as jnp
from jax.experimental import pallas as pl
from jax.experimental.pallas import tpu as pltpu

R_PAD = 128  # rank dimension padded to one full lane group


def _round_up(x: int, m: int) -> int:
    return ((x + m - 1) // m) * m


def _pad2(a, rows, cols, dtype):
    a = a.astype(dtype)
    return jnp.pad(a, ((0, rows - a.shape[0]), (0, cols - a.shape[1])))


# --------------------------------------------------------------------------- #
# Kernel
# --------------------------------------------------------------------------- #
def _lora_kernel(x_ref, w0_ref, ax_ref, wbs_ref, b_ref, o_ref, acc_ref):
    """One (i, j, k) grid step.

    x_ref   : (tm, tk)     compute_dtype  activations tile            (idx i,k)
    w0_ref  : (tk, tn)     compute_dtype  frozen weight tile          (idx k,j)
    ax_ref  : (tm, R_PAD)  compute_dtype  precomputed x @ Wa row tile (idx i,0)
    wbs_ref : (R_PAD, tn)  compute_dtype  scaling * LoRA-B col tile   (idx 0,j)
    b_ref   : (1, tn)      f32            folded bias b0+scaling*(ba@wb+bb)
    o_ref   : (tm, tn)                    output tile                 (idx i,j)
    acc_ref : (tm, tn)     f32 VMEM       accumulator (carried over K only)
    """
    k = pl.program_id(2)
    nk = pl.num_programs(2)

    # Fold the bias into the accumulator init (one fewer full-tile VPU pass
    # on the finalize critical path).
    @pl.when(k == 0)
    def _():
        acc_ref[...] = jnp.broadcast_to(b_ref[...], acc_ref.shape)

    # Base path: accumulate x_tile @ W0_tile over the K axis.
    acc_ref[...] += jnp.dot(
        x_ref[...], w0_ref[...], preferred_element_type=jnp.float32
    )

    # Finalize: add the tiny rank-r projection (bf16 MXU operands) and store.
    @pl.when(k == nk - 1)
    def _():
        lora = jnp.dot(
            ax_ref[...], wbs_ref[...], preferred_element_type=jnp.float32
        )
        o_ref[...] = (acc_ref[...] + lora).astype(o_ref.dtype)


# --------------------------------------------------------------------------- #
# One-time weight preparation (do this at load time, NOT per call)
# --------------------------------------------------------------------------- #
def prepare_lora_weights(
    w0, b0, wa, ba, wb, bb, *, scaling, compute_dtype=jnp.bfloat16,
    block_n=None, block_k=None,
):
    """
    w0 : (in_features, out_features)   original Linear weight (pre-transposed)
    b0 : (1, out_features)
    wa : (in_features, r)              matrix_A weight (pre-transposed)
    ba : (1, r)
    wb : (r, out_features)             matrix_B weight (pre-transposed)
    bb : (1, out_features)

    Returns (params, meta): padded / cast / bias-folded weights plus the static
    tiling metadata consumed by lora_forward.
    """
    K, N = w0.shape
    tn = block_n or min(1024, _round_up(N, 128))
    tk = block_k or min(1024, _round_up(K, 128))
    K_pad = _round_up(K, tk)
    N_pad = _round_up(N, tn)

    f32 = jnp.float32
    # (x@wa + ba)@wb + bb == x@wa@wb + (ba@wb + bb)  -> fold constants once.
    b_total = b0.astype(f32) + scaling * (ba.astype(f32) @ wb.astype(f32) + bb.astype(f32))
    wb_scaled = scaling * wb.astype(f32)

    params = {
        "w0": _pad2(w0, K_pad, N_pad, compute_dtype),            # (K_pad, N_pad)
        "wbs": _pad2(wb_scaled, R_PAD, N_pad, compute_dtype),    # (R_PAD, N_pad)
        "b": _pad2(b_total, 1, N_pad, f32),                      # (1, N_pad)
        "wa": wa.astype(f32),                                    # (K, r) for x@Wa
    }
    meta = {
        "K": K, "N": N, "K_pad": K_pad, "N_pad": N_pad,
        "tn": tn, "tk": tk, "compute_dtype": compute_dtype,
    }
    return params, meta


# --------------------------------------------------------------------------- #
# Forward
# --------------------------------------------------------------------------- #
def _vmem_limit_bytes(tm, tn, tk, compute_dtype, out_dtype):
    ib = jnp.dtype(compute_dtype).itemsize
    ob = jnp.dtype(out_dtype).itemsize
    ins = (tm * tk + tk * tn + tm * R_PAD + R_PAD * tn) * ib + tn * 4
    outs = tm * tn * ob
    acc = tm * tn * 4
    est = 2 * (ins + outs) + acc  # double-buffered in/out + accumulator
    # Headroom, but stay well under v7x's 64 MiB physical VMEM.
    return int(min(max(est * 3 // 2 + (4 << 20), 32 << 20), 48 << 20))


@functools.partial(
    jax.jit,
    static_argnames=(
        "K", "N", "K_pad", "N_pad", "tn", "tk", "compute_dtype",
        "block_m", "out_dtype",
    ),
)
def _lora_forward_impl(
    x, w0_p, wbs_p, b_p, wa, *, K, N, K_pad, N_pad, tn, tk,
    compute_dtype, block_m, out_dtype,
):
    B = x.shape[0]
    tm = block_m or min(512, _round_up(B, 16))
    M_pad = _round_up(B, tm)

    # Hoisted LoRA A-projection: tiny (B,K)x(K,r) GEMM, done once per call.
    ax = x.astype(jnp.float32) @ wa                                    # (B, r)
    ax_p = _pad2(ax, M_pad, R_PAD, compute_dtype)                      # (M_pad, R_PAD)

    x_p = _pad2(x, M_pad, K_pad, compute_dtype)                        # (M_pad, K_pad)

    grid = (M_pad // tm, N_pad // tn, K_pad // tk)

    out_p = pl.pallas_call(
        _lora_kernel,
        out_shape=jax.ShapeDtypeStruct((M_pad, N_pad), out_dtype),
        grid_spec=pltpu.PrefetchScalarGridSpec(
            num_scalar_prefetch=0,
            grid=grid,
            in_specs=[
                pl.BlockSpec((tm, tk), lambda i, j, k: (i, k)),        # x
                pl.BlockSpec((tk, tn), lambda i, j, k: (k, j)),        # W0
                pl.BlockSpec((tm, R_PAD), lambda i, j, k: (i, 0)),     # x @ Wa
                pl.BlockSpec((R_PAD, tn), lambda i, j, k: (0, j)),     # scaling*Wb
                pl.BlockSpec((1, tn), lambda i, j, k: (0, j)),         # folded bias
            ],
            out_specs=pl.BlockSpec((tm, tn), lambda i, j, k: (i, j)),
            scratch_shapes=[
                pltpu.VMEM((tm, tn), jnp.float32),                     # accumulator
            ],
        ),
        compiler_params=pltpu.CompilerParams(
            # Only the K axis carries scratch state (accumulator), so both
            # M and N are megacore-parallel (v7x: both TCs busy).
            dimension_semantics=("parallel", "parallel", "arbitrary"),
            vmem_limit_bytes=_vmem_limit_bytes(tm, tn, tk, compute_dtype, out_dtype),
        ),
    )(x_p, w0_p, ax_p, wbs_p, b_p)

    return out_p[:B, :N]


def lora_forward(x, params, meta, *, block_m=None, out_dtype=None):
    """x: (B, in_features). params/meta from prepare_lora_weights."""
    out_dtype = jnp.dtype(out_dtype if out_dtype is not None else x.dtype)
    return _lora_forward_impl(
        x, params["w0"], params["wbs"], params["b"], params["wa"],
        K=meta["K"], N=meta["N"], K_pad=meta["K_pad"], N_pad=meta["N_pad"],
        tn=meta["tn"], tk=meta["tk"], compute_dtype=meta["compute_dtype"],
        block_m=block_m, out_dtype=out_dtype,
    )


def lora_reference(x, w0, b0, wa, ba, wb, bb, scaling):
    base = x @ w0 + b0
    lora = (x @ wa + ba) @ wb + bb
    return base + scaling * lora


if __name__ == "__main__":
    key = jax.random.PRNGKey(0)
    batch, in_features, out_features, r = 16, 256, 256, 4
    alpha = 1
    scaling = alpha / r

    ks = jax.random.split(key, 7)
    x = jax.random.normal(ks[0], (batch, in_features), jnp.float32)
    w0 = jax.random.uniform(ks[1], (in_features, out_features), jnp.float32, -0.1, 0.1)
    b0 = jax.random.uniform(ks[2], (1, out_features), jnp.float32, -0.1, 0.1)
    wa = jax.random.uniform(ks[3], (in_features, r), jnp.float32, -0.1, 0.1)
    ba = jax.random.uniform(ks[4], (1, r), jnp.float32, -0.1, 0.1)
    # NOTE: faithful PyTorch init zeroes matrix_B; use random here so the
    # low-rank path is actually exercised by the test.
    wb = jax.random.uniform(ks[5], (r, out_features), jnp.float32, -0.1, 0.1)
    bb = jax.random.uniform(ks[6], (1, out_features), jnp.float32, -0.1, 0.1)

    ref = lora_reference(x, w0, b0, wa, ba, wb, bb, scaling)

    # bf16 MXU operands, small blocks so the full (M,N,K) grid is exercised
    # (grid = (1, 2, 2)); weights are prepared once outside the jitted forward.
    params_bf16, meta_bf16 = prepare_lora_weights(
        w0, b0, wa, ba, wb, bb, scaling=scaling,
        compute_dtype=jnp.bfloat16, block_n=128, block_k=128,
    )
    out_bf16 = lora_forward(x, params_bf16, meta_bf16)
    out_bf16 = jax.block_until_ready(out_bf16)
    assert out_bf16.shape == (batch, out_features)
    assert jnp.allclose(out_bf16, ref, atol=5e-2, rtol=5e-2), "bf16 kernel mismatch"

    # f32 operands, default (single-tile) blocks: tight numerical check.
    params_f32, meta_f32 = prepare_lora_weights(
        w0, b0, wa, ba, wb, bb, scaling=scaling, compute_dtype=jnp.float32,
    )
    out_f32 = lora_forward(x, params_f32, meta_f32)
    out_f32 = jax.block_until_ready(out_f32)
    assert jnp.allclose(out_f32, ref, atol=1e-4, rtol=1e-4), "f32 kernel mismatch"

    print("KERNEL_OK")
</pallas_src>

<mosaic_0001>
module attributes {stable_mosaic.version = 11 : i64} {
  func.func @_lora_kernel(%arg0: i32, %arg1: i32, %arg2: i32, %arg3: memref<16x128xbf16, #tpu.memory_space<vmem>>, %arg4: memref<128x128xbf16, #tpu.memory_space<vmem>>, %arg5: memref<16x128xbf16, #tpu.memory_space<vmem>>, %arg6: memref<128x128xbf16, #tpu.memory_space<vmem>>, %arg7: memref<1x128xf32, #tpu.memory_space<vmem>>, %arg8: memref<16x128xf32, #tpu.memory_space<vmem>>, %arg9: memref<16x128xf32, #tpu.memory_space<vmem>>) attributes {dimension_semantics = [#tpu.dimension_semantics<parallel>, #tpu.dimension_semantics<parallel>, #tpu.dimension_semantics<arbitrary>], iteration_bounds = array<i64: 1, 2, 2>, scalar_prefetch = 0 : i64, scratch_operands = 1 : i64, tpu.core_type = #tpu.core_type<tc>, window_params = [{transform_indices = @transform_0, window_bounds = array<i64: 16, 128>}, {transform_indices = @transform_1, window_bounds = array<i64: 128, 128>}, {transform_indices = @transform_2, window_bounds = array<i64: 16, 128>}, {transform_indices = @transform_3, window_bounds = array<i64: 128, 128>}, {transform_indices = @transform_4, window_bounds = array<i64: 1, 128>}, {transform_indices = @transform_5, window_bounds = array<i64: 16, 128>}]} {
    %c0_i32 = arith.constant 0 : i32
    %0 = arith.cmpi eq, %arg2, %c0_i32 : i32
    %1 = arith.extui %0 : i1 to i32
    %c0_i32_0 = arith.constant 0 : i32
    %2 = arith.cmpi ne, %1, %c0_i32_0 : i32
    scf.if %2 {
      %c0_9 = arith.constant 0 : index
      %c0_10 = arith.constant 0 : index
      %12 = vector.load %arg7[%c0_9, %c0_10] : memref<1x128xf32, #tpu.memory_space<vmem>>, vector<1x128xf32>
      %13 = vector.shape_cast %12 : vector<1x128xf32> to vector<1x128xf32>
      %14 = vector.broadcast %13 : vector<1x128xf32> to vector<16x128xf32>
      %c0_11 = arith.constant 0 : index
      %c0_12 = arith.constant 0 : index
      %15 = vector.load %arg9[%c0_11, %c0_12] : memref<16x128xf32, #tpu.memory_space<vmem>>, vector<16x128xf32>
      tpu.vector_store %arg9[%c0_11, %c0_12], %14 {strides = array<i32>} : memref<16x128xf32, #tpu.memory_space<vmem>>, vector<16x128xf32>,
    } else {
    }
    %c0 = arith.constant 0 : index
    %c0_1 = arith.constant 0 : index
    %3 = vector.load %arg9[%c0, %c0_1] : memref<16x128xf32, #tpu.memory_space<vmem>>, vector<16x128xf32>
    %c0_2 = arith.constant 0 : index
    %c0_3 = arith.constant 0 : index
    %4 = vector.load %arg3[%c0_2, %c0_3] : memref<16x128xbf16, #tpu.memory_space<vmem>>, vector<16x128xbf16>
    %c0_4 = arith.constant 0 : index
    %c0_5 = arith.constant 0 : index
    %5 = vector.load %arg4[%c0_4, %c0_5] : memref<128x128xbf16, #tpu.memory_space<vmem>>, vector<128x128xbf16>
    %cst = arith.constant dense<0.000000e+00> : vector<16x128xf32>
    %6 = tpu.matmul %4, %5, %cst {dimension_numbers = #tpu.dot_dimension_numbers<[1], [0], [0], [1], [0, 0, 1, 1], [], []>} : vector<16x128xbf16>, vector<128x128xbf16>, vector<16x128xf32> -> vector<16x128xf32>
    %7 = arith.addf %3, %6 : vector<16x128xf32>
    %c0_6 = arith.constant 0 : index
    %c0_7 = arith.constant 0 : index
    %8 = vector.load %arg9[%c0_6, %c0_7] : memref<16x128xf32, #tpu.memory_space<vmem>>, vector<16x128xf32>
    tpu.vector_store %arg9[%c0_6, %c0_7], %7 {strides = array<i32>} : memref<16x128xf32, #tpu.memory_space<vmem>>, vector<16x128xf32>,
    %c1_i32 = arith.constant 1 : i32
    %9 = arith.cmpi eq, %arg2, %c1_i32 : i32
    %10 = arith.extui %9 : i1 to i32
    %c0_i32_8 = arith.constant 0 : i32
    %11 = arith.cmpi ne, %10, %c0_i32_8 : i32
    scf.if %11 {
      %c0_9 = arith.constant 0 : index
      %c0_10 = arith.constant 0 : index
      %12 = vector.load %arg5[%c0_9, %c0_10] : memref<16x128xbf16, #tpu.memory_space<vmem>>, vector<16x128xbf16>
      %c0_11 = arith.constant 0 : index
      %c0_12 = arith.constant 0 : index
      %13 = vector.load %arg6[%c0_11, %c0_12] : memref<128x128xbf16, #tpu.memory_space<vmem>>, vector<128x128xbf16>
      %cst_13 = arith.constant dense<0.000000e+00> : vector<16x128xf32>
      %14 = tpu.matmul %12, %13, %cst_13 {dimension_numbers = #tpu.dot_dimension_numbers<[1], [0], [0], [1], [0, 0, 1, 1], [], []>} : vector<16x128xbf16>, vector<128x128xbf16>, vector<16x128xf32> -> vector<16x128xf32>
      %c0_14 = arith.constant 0 : index
      %c0_15 = arith.constant 0 : index
      %15 = vector.load %arg9[%c0_14, %c0_15] : memref<16x128xf32, #tpu.memory_space<vmem>>, vector<16x128xf32>
      %16 = arith.addf %15, %14 : vector<16x128xf32>
      %c0_16 = arith.constant 0 : index
      %c0_17 = arith.constant 0 : index
      %17 = vector.load %arg8[%c0_16, %c0_17] : memref<16x128xf32, #tpu.memory_space<vmem>>, vector<16x128xf32>
      tpu.vector_store %arg8[%c0_16, %c0_17], %16 {strides = array<i32>} : memref<16x128xf32, #tpu.memory_space<vmem>>, vector<16x128xf32>,
    } else {
    }
    return
  }
  func.func @transform_0(%arg0: i32, %arg1: i32, %arg2: i32) -> (i32, i32) {
    %c0_i32 = arith.constant 0 : i32
    return %arg0, %arg2 : i32, i32
  }
  func.func @transform_1(%arg0: i32, %arg1: i32, %arg2: i32) -> (i32, i32) {
    %c0_i32 = arith.constant 0 : i32
    return %arg2, %arg1 : i32, i32
  }
  func.func @transform_2(%arg0: i32, %arg1: i32, %arg2: i32) -> (i32, i32) {
    %c0_i32 = arith.constant 0 : i32
    %c0_i32_0 = arith.constant 0 : i32
    return %arg0, %c0_i32 : i32, i32
  }
  func.func @transform_3(%arg0: i32, %arg1: i32, %arg2: i32) -> (i32, i32) {
    %c0_i32 = arith.constant 0 : i32
    %c0_i32_0 = arith.constant 0 : i32
    return %c0_i32, %arg1 : i32, i32
  }
  func.func @transform_4(%arg0: i32, %arg1: i32, %arg2: i32) -> (i32, i32) {
    %c0_i32 = arith.constant 0 : i32
    %c0_i32_0 = arith.constant 0 : i32
    return %c0_i32, %arg1 : i32, i32
  }
  func.func @transform_5(%arg0: i32, %arg1: i32, %arg2: i32) -> (i32, i32) {
    %c0_i32 = arith.constant 0 : i32
    return %arg0, %arg1 : i32, i32
  }
}

</mosaic_0001>

<bundles_post_ra>
// kernel: _lora_forward_impl.1
= control target key start
LH: loop header
LB: loop body
LE: loop exit
PB: predicated region body
PF: predicated region fallthrough
CT: control target
= control target key end

     0   :  { %s1699_s0 = inlined_call_operand.vmem [shape: bf16[16,256], index: 0, kind: input, shape index: {}]   ;;  %s1700_s1 = inlined_call_operand.hbm [shape: bf16[256,256], index: 1, kind: input, shape index: {}]   ;;  %s1701_s2 = inlined_call_operand.vmem [shape: bf16[16,128], index: 2, kind: input, shape index: {}]   ;;  %s1702_s3 = inlined_call_operand.hbm [shape: bf16[128,256], index: 3, kind: input, shape index: {}]   ;;  %s1703_s4 = inlined_call_operand.vmem [shape: f32[1,256], index: 4, kind: input, shape index: {}]   ;;  %s1704_s5 = inlined_call_operand.hbm [shape: f32[16,256], index: 5, kind: output, shape index: {}]  }
   0x1   :  { %1716 = sst [smem:[#allocation22_spill]] %s1699_s0 }
   0x2   :  { %1717 = sst [smem:[#allocation23_spill]] %s1701_s2 }
   0x3   :  { %1718 = sst [smem:[#allocation24_spill]] %s1704_s5 }
   0x4   :  { %10 = vsyncpa [#allocation5], 0 }
   0x5   :  { %12 = vsyncpa [#allocation5 + $0x1], 0 }
   0x6   :  { %13 = vsyncpa [#allocation8], 0 }
   0x7   :  { %15 = vsyncpa [#allocation8 + $0x1], 0 }
   0x8   :  { %16 = vsyncpa [#allocation6], 0 }
   0x9   :  { %18 = vsyncpa [#allocation6 + $0x1], 0  ;;  %s1334_s18 = smov 0   ;;  %s1336_s19 = smov 0  }
   0xa   :  { %s1338_s20 = smov 0   ;;  %s1340_s21 = smov 0  }
   0xb   :  { %s1342_s22 = smov 0   ;;  %s1344_s23 = smov 0  }
   0xc   :  { %s1346_s24 = smov 0   ;;  %s1348_s25 = smov 0  }
   0xd   :  { %s1350_s26 = smov 0   ;;  %s1352_s27 = smov 0  }
   0xe   :  { %s1354_s28 = smov 0   ;;  %s1356_s29 = smov 0  }
   0xf   :  { %s1358_s30 = smov 0  }
  0x10 LB: > { %1719 = sst [smem:[#allocation13_spill]] %s1241_s18  ;;  %s846_s6 = sadd.s32 4294967295, %s1289_s30   ;;  %s1289_s30 = sphi %s1358_s30, %s24_s30   ;;  %s1285_s29 = sphi %s1356_s29, %s1762_s29   ;;  %s1281_s28 = sphi %s1354_s28, %s1761_s28   ;;  %s1277_s27 = sphi %s1352_s27, %s1760_s27   ;;  %s1273_s26 = sphi %s1350_s26, %s1759_s26   ;;  %s1269_s25 = sphi %s1348_s25, %s1750_s25   ;;  %s1265_s24 = sphi %s1346_s24, %s1749_s24   ;;  %s1261_s23 = sphi %s1344_s23, %s1758_s23   ;;  %s1257_s22 = sphi %s1342_s22, %s1757_s22   ;;  %s1253_s21 = sphi %s1340_s21, %s1756_s21   ;;  %s1249_s20 = sphi %s1338_s20, %s1755_s20   ;;  %s1245_s19 = sphi %s1336_s19, %s1754_s19   ;;  %s1241_s18 = sphi %s1334_s18, %s1753_s18  }
  0x11   : > { %1720 = sst [smem:[#allocation14_spill]] %s1269_s25  ;;  %s36_s8 = sadd.s32 1, %s1281_s28 }
  0x12   : > { %s39_s9 = sadd.s32 1, %s1285_s29  ;;  %p37_p0 = scmp.ge.s32.totalorder %s36_s8, 2 }
  0x13   : > { %s52_s10 = sadd.s32 1, %s1269_s25  ;;  %p59_p1 = scmp.ne.s32.totalorder %s1269_s25, %s1265_s24 }
  0x14   : > { %p60_p2 = scmp.eq.s32.totalorder %s1289_s30, 0  ;;  %s1764_s8 = smov (%p37_p0, %s36_s8), 0 }
  0x15   : > { %1721 = sst [smem:[#allocation15_spill]] %s1764_s8  ;;  %s1766_s9 = smov (!%p37_p0, %s39_s9), %s1285_s29 }
  0x16   : > { %s48_s11 = ssub.s32 %s1281_s28, %s1764_s8  ;;  %p1414_p3 = por %p60_p2, %p59_p1 }
  0x17   : > { %p41_p4 = scmp.ge.s32.totalorder %s1766_s9, 2  ;;  %p50_p5 = scmp.eq.s32.totalorder %s48_s11, 0 }
  0x18   : > { %s80_s13 = sadd.s32 1, %s1261_s23  ;;  %p87_p6 = scmp.ne.s32.totalorder %s1261_s23, %s1257_s22 }
  0x19   : > { %s1768_s9 = smov (%p41_p4, %s1766_s9), 0  ;;  %p93_p8 = scmp.ne.s32.totalorder %s1257_s22, %s1253_s21 }
  0x1a   : > { %1723 = sst [smem:[#allocation16_spill]] %s1768_s9  ;;  %s76_s15 = ssub.s32 %s1285_s29, %s1768_s9 }
  0x1b   : > { %s1424_s14 = scalar_select %p50_p5, %s1269_s25, %s52_s10  }
  0x1c   : > { %p1430_p7 = por %p87_p6, %p60_p2  ;;  %s77_s17 = sor.u32 %s76_s15, %s48_s11 }
  0x1d   : > { %1724 = sst [smem:[#allocation17_spill]] %s1424_s14  ;;  %p78_p9 = scmp.eq.s32.totalorder %s77_s17, 0 }
  0x1e   : > { %p94_p10 = scmp.eq.s32.totalorder %s846_s6, 0  ;;  %p130_p11 = scmp.eq.s32.totalorder %s76_s15, 0 }
  0x1f   : > { %s132_s7 = sadd.s32 1, %s1249_s20  ;;  %p139_p13 = scmp.ne.s32.totalorder %s1249_s20, %s1245_s19 }
  0x20   : > { %s1440_s8 = scalar_select %p78_p9, %s1261_s23, %s80_s13  }
  0x21   : > { %p1442_p12 = por %p94_p10, %p93_p8  ;;  %p1453_p0 = por %p139_p13, %p60_p2 }
  0x22   : > { %1726 = sst [smem:[#allocation18_spill]] %s1440_s8  ;;  %p145_p1 = scmp.ne.s32.totalorder %s1245_s19, %s1241_s18 }
  0x23   : > { %s1727_s5 = scalar_select %p1442_p12, 1, 0 }
  0x24   : > { %s1449_s10 = scalar_select %p130_p11, %s1249_s20, %s132_s7  }
  0x25   : > { %p197_p4 = scmp.eq.s32.totalorder %s846_s6, 3  ;;  %s1730_s21 = sadd.s32 4294967294, %s1289_s30  }
  0x26   : > { %1728 = sst [smem:[#allocation19_spill]] %s1449_s10  ;;  %p203_p5 = scmp.eq.s32.totalorder %s1730_s21, 3 }
  0x27   : > { %p1463_p6 = por %p145_p1, %p94_p10  ;;  %p1467_p8 = por %p197_p4, %p139_p13 }
  0x28   : > { %p1471_p9 = por %p203_p5, %p145_p1  ;;  %p850_p2 = scmp.ge.s32.totalorder %s1289_s30, 4 }
  0x29   : > { %s1731_s11 = scalar_select %p1463_p6, 1, 0 }
  0x2a   : > { %s1732_s13 = scalar_select %p1467_p8, 1, 0 }
  0x2b   : > { %s1734_s7 = scalar_select %p1471_p9, 1, 0 }
  0x2c   : > { %1733 = sst [smem:[#allocation20_spill]] %s1732_s13  ;;  %228 = sbr.rel (%p850_p2) target bundleno = 115 (0x73), region = 20 }
  0x2d   : > { %1735 = sst [smem:[#allocation21_spill]] %s1734_s7 }
  0x33   : > { %231 = sbr.rel (!%p1414_p3) target bundleno = 62 (0x3e), region = 24  ;;  %s233_s6 = sand.u32 (%p1414_p3), 1, %s1269_s25  }
  0x34   : > { %s852_s15 = sshll.u32 (%p1414_p3), %s1281_s28, 2  ;;  %s851_s17 = sshll.u32 (%p1414_p3), %s233_s6, 3 }
  0x35   : > { %s1736_s0 = sld [smem:[#allocation22_spill]] (%p1414_p3)  ;;  %s235_s10 = scalar_lea.vmem (%p1414_p3), [#allocation3], %s851_s17 }
  0x3b   : > { %s240_s8 = scalar_lea.vmem %s1736_s0, %s852_s15 }
  0x3c   : > { %v256_v0 = vld [vmem:[%s240_s8] sm:$0xf]  ;;  %v258_v1 = vld [vmem:[%s240_s8 + $0x8] sm:$0xf] }
  0x3d   : > { %257 = vst [vmem:[%s235_s10] sm:$0xf] %v256_v0  ;;  %259 = vst [vmem:[%s235_s10 + $0x4] sm:$0xf] %v258_v1 }
  0x3e PF: > { %s287_s12 = sand.u32 1, %s1261_s23   ;;  %s889_s7 = sshll.u32 %s1281_s28, 5 }
  0x3f   : > { %s853_s25 = sshll.u32 %s287_s12, 6  ;;  %s297_s18 = sadd.s32 %s1285_s29, %s889_s7 }
  0x40   : > { %s856_s6 = sshll.u32 %s297_s18, 6  ;;  %s291_s13 = scalar_lea.vmem [#allocation4], %s853_s25 }
  0x41   : > { %s300_s2 = sshll.u32 %s291_s13, 4  ;;  %s1489_s8 = scalar_lea.hbm %s1700_s1, %s856_s6  ;;  %s1491_s2 = int_to_ptr.vmem [resolvable:$true] %s300_s2 }
  0x42   : > { %s310_s10 = sand.u32 1, %s1249_s20   ;;  %s1494_s17 = scalar_lea.sflag [#allocation5], %s287_s12 }
  0x43   : > { %s1091_s21 = scalar_lea.hbm %s1489_s8, 1024  ;;  %s1095_s13 = scalar_lea.hbm %s1700_s1, 4096 }
  0x44   : > { %p1092_p3 = scmp.ne.s32.totalorder %s1489_s8, %s1091_s21  ;;  %p1096_p13 = scmp.lt.u32.totalorder %s1489_s8, %s1700_s1 }
  0x45   : > { %p1097_p1 = scmp.lt.u32.totalorder %s1095_s13, %s1091_s21  ;;  %p1099_p5 = scmp.lt.u32.totalorder %s1091_s21, %s1489_s8 }
  0x46   : > { %p1093_p10 = pnand %p1092_p3, %p1430_p7 }
  0x47   : > { %p1098_p4 = por %p1097_p1, %p1096_p13 }
  0x48   : > { %p1094_p11 = pneg %p1093_p10 }
  0x49   : > { %p1100_p2 = por %p1099_p5, %p1098_p4 }
  0x4b   : > { %p1101_p9 = pnand %p1100_p2, %p1094_p11 }
  0x4d   : > { %1104 = shalt.err (!%p1101_p9)
}
  0x4e   : > { %s1105_s12 = scalar_lea.vmem %s1491_s2, 1024  ;;  %s1291_s14 = smov [#allocation4]  }
  0x4f   : > { %p1106_p3 = scmp.ne.s32.totalorder %s1491_s2, %s1105_s12  ;;  %s1109_s15 = sshll.u32 %s1291_s14, 4  ;;  %s1110_s15 = int_to_ptr.vmem [resolvable:$false] %s1109_s15 }
  0x50   : > { %s1111_s18 = scalar_lea.vmem %s1110_s15, 2048  ;;  %p1112_p6 = scmp.lt.s32.totalorder %s1491_s2, %s1110_s15 }
  0x51   : > { %p1107_p10 = pnand %p1106_p3, %p1430_p7  ;;  %p1113_p12 = scmp.lt.s32.totalorder %s1111_s18, %s1105_s12 }
  0x53   : > { %p1108_p8 = pneg %p1107_p10  ;;  %p1114_p13 = por %p1113_p12, %p1112_p6 }
  0x55   : > { %p1115_p1 = pnand %p1114_p13, %p1108_p8 }
  0x57   : > { %1118 = shalt.err (!%p1115_p1)
}
  0x58   : > { %s1292_s21 = smov 128   ;;  %s1293_s25 = smov 64  }
  0x59   : > { %s1294_s13 = smov 4   ;;  %s857_s7 = sshll.u32 %s310_s10, 6 }
  0x5a   : > { %948 = dma.hbm_to_vmem [thread:$0]  (%p1430_p7), %s1489_s8, 1024, %s1491_s2, %s1494_s17, %s1292_s21, %s1293_s25, %s1294_s13  }
  0x5b   : > { %s858_s6 = sshll.u32 %s1285_s29, 6  ;;  %s314_s18 = scalar_lea.vmem [#allocation7], %s857_s7 }
  0x5c   : > { %s1527_s15 = scalar_lea.hbm %s1702_s3, %s858_s6  ;;  %s320_s0 = sshll.u32 %s314_s18, 4  ;;  %s1529_s0 = int_to_ptr.vmem [resolvable:$true] %s320_s0 }
  0x5d   : > { %s1533_s16 = scalar_lea.sflag [#allocation8], %s310_s10  ;;  %s1119_s2 = scalar_lea.hbm %s1527_s15, 1024 }
  0x5e   : > { %p1120_p7 = scmp.ne.s32.totalorder %s1527_s15, %s1119_s2  ;;  %s1123_s6 = scalar_lea.hbm %s1702_s3, 2048 }
  0x5f   : > { %p1124_p8 = scmp.lt.u32.totalorder %s1527_s15, %s1702_s3  ;;  %p1125_p9 = scmp.lt.u32.totalorder %s1123_s6, %s1119_s2 }
  0x60   : > { %p1121_p12 = pnand %p1120_p7, %p1453_p0  ;;  %p1127_p4 = scmp.lt.u32.totalorder %s1119_s2, %s1527_s15 }
  0x61   : > { %p1126_p11 = por %p1125_p9, %p1124_p8 }
  0x62   : > { %p1122_p6 = pneg %p1121_p12 }
  0x63   : > { %p1128_p5 = por %p1127_p4, %p1126_p11 }
  0x65   : > { %p1129_p2 = pnand %p1128_p5, %p1122_p6 }
  0x67   : > { %1132 = shalt.err (!%p1129_p2)
}
  0x68   : > { %s1133_s10 = scalar_lea.vmem %s1529_s0, 1024  ;;  %s1295_s7 = smov [#allocation7]  }
  0x69   : > { %p1134_p3 = scmp.ne.s32.totalorder %s1529_s0, %s1133_s10  ;;  %s1137_s18 = sshll.u32 %s1295_s7, 4  ;;  %s1138_s18 = int_to_ptr.vmem [resolvable:$false] %s1137_s18 }
  0x6a   : > { %s1139_s8 = scalar_lea.vmem %s1138_s18, 2048  ;;  %p1140_p1 = scmp.lt.s32.totalorder %s1529_s0, %s1138_s18 }
  0x6b   : > { %p1135_p10 = pnand %p1134_p3, %p1453_p0  ;;  %p1141_p7 = scmp.lt.s32.totalorder %s1139_s8, %s1133_s10 }
  0x6d   : > { %p1136_p13 = pneg %p1135_p10  ;;  %p1142_p12 = por %p1141_p7, %p1140_p1 }
  0x6f   : > { %p1143_p8 = pnand %p1142_p12, %p1136_p13 }
  0x71   : > { %1146 = shalt.err (!%p1143_p8)
}
  0x72   : > { %949 = dma.hbm_to_vmem [thread:$0]  (%p1453_p0), %s1527_s15, 1024, %s1529_s0, %s1533_s16, %s1292_s21, %s1293_s25, %s1294_s13  }
  0x73 PF: > { %p859_p6 = scmp.ge.s32.totalorder %s1289_s30, 1  ;;  %p334_p9 = scmp.lt.s32.totalorder %s1289_s30, 5 }
  0x75   : > { %p335_p11 = pnand %p859_p6, %p334_p9 }
  0x76   : > { %s341_s2 = sand.u32 (!%p335_p11), 1, %s1265_s24   ;;  %s347_s17 = sand.u32 (!%p335_p11), 1, %s1257_s22  }
  0x77   : > { %338 = sbr.rel (%p335_p11) target bundleno = 634 (0x27a), region = 77  ;;  %s1564_s9 = sshll.u32 (!%p335_p11), %s341_s2, 3 }
  0x78   : > { %s861_s6 = sshll.u32 (!%p335_p11), %s347_s17, 6  ;;  %s343_s12 = scalar_lea.vmem (!%p335_p11), [#allocation3], %s1564_s9 }
  0x79   : > { %s348_s14 = scalar_lea.sflag (!%p335_p11), [#allocation5], %s347_s17  ;;  %s1567_s10 = scalar_lea.vmem (!%p335_p11), [#allocation4], %s861_s6 }
  0x7a   : > { %p1737_p0 = scmp.ne.s32.totalorder (!%p335_p11), %s1727_s5, 0 }
  0x7e   : > { %1228 = dma.done.wait (%p1737_p0), %s348_s14, 1024  }
  0x7f   : > { %1230 = vsyncadd (%p1737_p0), %s348_s14, 4294966272  ;;  %s1574_s0 = sand.u32 1, %s1245_s19   ;;  %p1738_p4 = scmp.ne.s32.totalorder %s1731_s11, 0 }
  0x80   : > { %s862_s24 = sshll.u32 %s1574_s0, 6  ;;  %s357_s21 = scalar_lea.sflag [#allocation8], %s1574_s0 }
  0x81   : > { %s1578_s25 = scalar_lea.vmem [#allocation7], %s862_s24 }
  0x82   : > { %1232 = dma.done.wait (%p1738_p4), %s357_s21, 1024  }
  0x83   : > { %1234 = vsyncadd (%p1738_p4), %s357_s21, 4294966272  ;;  %s863_s5 = sshll.u32 %s1574_s0, 4  ;;  %p412_p5 = scmp.lt.s32.totalorder %s1277_s27, 1 }
  0x84   : > { %s1590_s18 = scalar_lea.vmem [#allocation9], %s863_s5  ;;  %p864_p2 = scmp.ne.s32.totalorder %s1273_s26, 0 }
  0x85   : > { %s413_s13 = scalar_select %p412_p5, %s1277_s27, 1 }
  0x86   : > { %420 = sbr.rel (%p864_p2) target bundleno = 141 (0x8d), region = 93 }
  0x87   : > { %s414_s7 = scalar_lea.vmem %s1703_s4, %s413_s13 }
  0x88   : > { %v865_v2 = vld [vmem:[%s414_s7] ss:$0 sm:$0xff] (!%p864_p2) }
  0x89   : > { %428 = vst [vmem:[#allocation2] sm:$0xff] (!%p864_p2), %v865_v2  ;;  %429 = vst [vmem:[#allocation2 + $0x8] sm:$0xff] (!%p864_p2), %v865_v2 }
  0x8d PF: > { %v1073_v3 = vld [vmem:[%s1567_s10] sm:$0xff]   ;;  %v1296_v4 = vmov 0.0   ;;  %v1074_v5 = vld [vmem:[%s1567_s10 + $0x8] sm:$0xff]   ;;  %vm1297_vm0 = vmmov 0   ;;  %v1075_v6 = vld [vmem:[%s1567_s10 + $0x10] sm:$0xff]   ;;  %p875_p3 = scmp.ne.s32.totalorder %s1273_s26, 1 }
  0x8e   : > { %908 = vmatprep.subr.bf16.mxu0 %v1296_v4  ;;  %924 = vmatprep.mubr.msk.bf16.mxu0 %vm1297_vm0, %v1296_v4  ;;  %v1076_v7 = vld [vmem:[%s1567_s10 + $0x18] sm:$0xff]   ;;  %v1077_v8 = vld [vmem:[%s1567_s10 + $0x20] sm:$0xff]   ;;  %v1078_v9 = vld [vmem:[%s1567_s10 + $0x28] sm:$0xff]   ;;  %v1298_v22 = vmov (!%p875_p3), 0.0   ;;  %vm1299_vm1 = vmmov (!%p875_p3), 0   ;;  %s1739_s8 = sld [smem:[#allocation23_spill]] (!%p875_p3) }
  0x8f   : > { %909 = vmatpush3.bf16.msra.mxu0 %v1073_v3  ;;  %v1079_v10 = vld [vmem:[%s1567_s10 + $0x30] sm:$0xff]   ;;  %v1080_v11 = vld [vmem:[%s1567_s10 + $0x38] sm:$0xff]   ;;  %v1082_v21 = vld [vmem:[%s1578_s25] sm:$0xff] (!%p875_p3)  }
  0x90   : > { %910 = vmatprep.subr.bf16.mxu0 %v1296_v4  ;;  %v1081_v12 = vld [vmem:[%s343_s12] sm:$0xff]   ;;  %v430_v13 = vld [vmem:[#allocation2] sm:$0xff]  ;;  %v431_v15 = vld [vmem:[#allocation2 + $0x8] sm:$0xff] }
  0x91   : > { %v1083_v23 = vld [vmem:[%s1578_s25 + $0x8] sm:$0xff] (!%p875_p3)   ;;  %v1084_v24 = vld [vmem:[%s1578_s25 + $0x10] sm:$0xff] (!%p875_p3)   ;;  %v1085_v25 = vld [vmem:[%s1578_s25 + $0x18] sm:$0xff] (!%p875_p3)  }
  0x92   : > { %v1086_v26 = vld [vmem:[%s1578_s25 + $0x20] sm:$0xff] (!%p875_p3)   ;;  %v1087_v27 = vld [vmem:[%s1578_s25 + $0x28] sm:$0xff] (!%p875_p3)   ;;  %v1088_v28 = vld [vmem:[%s1578_s25 + $0x30] sm:$0xff] (!%p875_p3)  }
  0x93   : > { %911 = vmatpush3.bf16.msra.mxu0 %v1074_v5  ;;  %v1089_v29 = vld [vmem:[%s1578_s25 + $0x38] sm:$0xff] (!%p875_p3)  }
  0x94   : > { %912 = vmatprep.subr.bf16.mxu0 %v1296_v4  ;;  %v1090_v30 = vld [vmem:[%s1739_s8] sm:$0xff] (!%p875_p3)  }
  0x97   : > { %913 = vmatpush3.bf16.msra.mxu0 %v1075_v6 }
  0x98   : > { %914 = vmatprep.subr.bf16.mxu0 %v1296_v4 }
  0x9b   : > { %915 = vmatpush3.bf16.msra.mxu0 %v1076_v7 }
  0x9c   : > { %916 = vmatprep.subr.bf16.mxu0 %v1296_v4 }
  0x9f   : > { %917 = vmatpush3.bf16.msra.mxu0 %v1077_v8 }
  0xa0   : > { %918 = vmatprep.subr.bf16.mxu0 %v1296_v4 }
  0xa3   : > { %919 = vmatpush3.bf16.msra.mxu0 %v1078_v9 }
  0xa4   : > { %920 = vmatprep.subr.bf16.mxu0 %v1296_v4 }
  0xa7   : > { %921 = vmatpush3.bf16.msra.mxu0 %v1079_v10 }
  0xa8   : > { %922 = vmatprep.subr.bf16.mxu0 %v1296_v4 }
  0xab   : > { %923 = vmatpush3.bf16.msra.mxu0 %v1080_v11 }
  0xac   : > { %928 = vmatprep.subr.bf16.mxu0 (!%p875_p3), %v1298_v22 }
  0xae   : > { %925 = vmatmul.mubr.bf16.vlgmr.msra.gmra.mrb[0].mxu0 %v1081_v12 }
  0xaf   : > { %929 = vmatpush3.bf16.msra.mxu0 (!%p875_p3), %v1082_v21  ;;  %944 = vmatprep.mubr.msk.bf16.mxu0 (!%p875_p3), %vm1299_vm1, %v1298_v22 }
  0xb0   : > { %930 = vmatprep.subr.bf16.mxu0 (!%p875_p3), %v1298_v22 }
  0xb3   : > { %931 = vmatpush3.bf16.msra.mxu0 (!%p875_p3), %v1083_v23 }
  0xb4   : > { %932 = vmatprep.subr.bf16.mxu0 (!%p875_p3), %v1298_v22 }
  0xb7   : > { %933 = vmatpush3.bf16.msra.mxu0 (!%p875_p3), %v1084_v24 }
  0xb8   : > { %934 = vmatprep.subr.bf16.mxu0 (!%p875_p3), %v1298_v22 }
  0xbb   : > { %935 = vmatpush3.bf16.msra.mxu0 (!%p875_p3), %v1085_v25 }
  0xbc   : > { %936 = vmatprep.subr.bf16.mxu0 (!%p875_p3), %v1298_v22 }
  0xbf   : > { %937 = vmatpush3.bf16.msra.mxu0 (!%p875_p3), %v1086_v26 }
  0xc0   : > { %938 = vmatprep.subr.bf16.mxu0 (!%p875_p3), %v1298_v22 }
  0xc3   : > { %939 = vmatpush3.bf16.msra.mxu0 (!%p875_p3), %v1087_v27 }
  0xc4   : > { %940 = vmatprep.subr.bf16.mxu0 (!%p875_p3), %v1298_v22 }
  0xc7   : > { %941 = vmatpush3.bf16.msra.mxu0 (!%p875_p3), %v1088_v28 }
  0xc8   : > { %942 = vmatprep.subr.bf16.mxu0 (!%p875_p3), %v1298_v22 }
  0xcb   : > { %943 = vmatpush3.bf16.msra.mxu0 (!%p875_p3), %v1089_v29 }
 0x180   : > { %552 = sbr.rel (%p875_p3) target bundleno = 605 (0x25d), region = 97 }
 0x181   : > { %v538_v14 = vpop.f32.mrb[0].mxu0 }
 0x182   : > { %v545_v16 = vadd.f32 %v538_v14, %v430_v13  ;;  %v926_v17 = vpop.f32.mrb[1].mxu0 }
 0x183   : > { %v541_v18 = vpop.f32.mrb[2].mxu0 }
 0x184   : > { %547 = vst [vmem:[#allocation2] sm:$0xff] %v545_v16  ;;  %v546_v19 = vadd.f32 %v541_v18, %v431_v15  ;;  %v927_v20 = vpop.f32.mrb[3].mxu0  ;;  %945 = vmatmul.mubr.bf16.vlgmr.msra.gmra.mrb[0].mxu0 (!%p875_p3), %v1090_v30 }
 0x186   : > { %548 = vst [vmem:[#allocation2 + $0x8] sm:$0xff] %v546_v19 }
 0x18b   : > { %v666_v31 = vld [vmem:[#allocation2] sm:$0xff] }
 0x18d   : > { %v667_v33 = vld [vmem:[#allocation2 + $0x8] sm:$0xff] }
 0x257   : > { %v659_v32 = vpop.f32.mrb[0].mxu0 }
 0x258   : > { %v668_v34 = vadd.f32 %v666_v31, %v659_v32  ;;  %v946_v35 = vpop.f32.mrb[1].mxu0 }
 0x259   : > { %v662_v36 = vpop.f32.mrb[2].mxu0 }
 0x25a   : > { %670 = vst [vmem:[%s1590_s18] sm:$0xff] %v668_v34  ;;  %v669_v37 = vadd.f32 %v667_v33, %v662_v36  ;;  %v947_v38 = vpop.f32.mrb[3].mxu0 }
 0x25c   : > { %671 = vst [vmem:[%s1590_s18 + $0x8] sm:$0xff] %v669_v37 }
 0x25d PF: > { %s1740_s2 = sld [smem:[#allocation20_spill]]  ;;  %s886_s17 = sshll.u32 %s1277_s27, 7 }
 0x25e   : > { %s1741_s12 = sld [smem:[#allocation24_spill]]  ;;  %s688_s10 = sshll.u32 %s1590_s18, 4  ;;  %s1624_s10 = int_to_ptr.vmem [resolvable:$true] %s688_s10 }
 0x25f   : > { %s673_s24 = scalar_lea.sflag [#allocation6], %s1574_s0  ;;  %s1147_s21 = scalar_lea.vmem %s1624_s10, 256 }
 0x260   : > { %p1148_p10 = scmp.ne.s32.totalorder %s1624_s10, %s1147_s21  ;;  %s1300_s25 = smov [#allocation9]  }
 0x261   : > { %s1151_s5 = sshll.u32 %s1300_s25, 4  ;;  %s1152_s5 = int_to_ptr.vmem [resolvable:$false] %s1151_s5 }
 0x262   : > { %s1153_s27 = scalar_lea.vmem %s1152_s5, 512  ;;  %p1154_p12 = scmp.lt.s32.totalorder %s1624_s10, %s1152_s5 }
 0x263   : > { %p1742_p13 = scmp.ne.s32.totalorder %s1740_s2, 0  ;;  %p1155_p8 = scmp.lt.s32.totalorder %s1153_s27, %s1147_s21 }
 0x264   : > { %s1621_s14 = scalar_lea.hbm %s1741_s12, %s886_s17 }
 0x265   : > { %p1149_p1 = pnand %p1148_p10, %p1742_p13  ;;  %p1156_p6 = por %p1155_p8, %p1154_p12 }
 0x267   : > { %p1150_p7 = pneg %p1149_p1 }
 0x269   : > { %p1157_p9 = pnand %p1156_p6, %p1150_p7 }
 0x26b   : > { %1160 = shalt.err (!%p1157_p9)
}
 0x26c   : > { %s1161_s13 = scalar_lea.hbm %s1621_s14, 256  ;;  %s1165_s7 = scalar_lea.hbm %s1741_s12, 512 }
 0x26d   : > { %p1162_p11 = scmp.ne.s32.totalorder %s1621_s14, %s1161_s13  ;;  %p1166_p5 = scmp.lt.u32.totalorder %s1621_s14, %s1741_s12 }
 0x26e   : > { %p1167_p2 = scmp.lt.u32.totalorder %s1165_s7, %s1161_s13  ;;  %p1169_p10 = scmp.lt.u32.totalorder %s1161_s13, %s1621_s14 }
 0x26f   : > { %p1163_p0 = pnand %p1162_p11, %p1742_p13 }
 0x270   : > { %p1168_p3 = por %p1167_p2, %p1166_p5 }
 0x271   : > { %p1164_p4 = pneg %p1163_p0 }
 0x272   : > { %p1170_p1 = por %p1169_p10, %p1168_p3 }
 0x274   : > { %p1171_p7 = pnand %p1170_p1, %p1164_p4 }
 0x276   : > { %1174 = shalt.err (!%p1171_p7)
}
 0x277   : > { %s1301_s11 = smov 128   ;;  %s1302_s8 = smov 256  }
 0x278   : > { %s1303_s17 = smov 8  }
 0x279   : > { %952 = dma.vmem_to_hbm [thread:$0]  (%p1742_p13), %s1624_s10, 256, %s1621_s14, %s673_s24, %s1301_s11, %s1302_s8, %s1303_s17  }
 0x27a PF: > { %s1743_s9 = sld [smem:[#allocation13_spill]]  ;;  %s1744_s6 = sld [smem:[#allocation21_spill]] }
 0x27b   : > { %p958_p12 = scmp.ge.s32.totalorder %s1289_s30, 2 }
 0x280   : > { %s703_s21 = sand.u32 1, %s1743_s9   ;;  %p1745_p8 = scmp.ne.s32.totalorder %s1744_s6, 0 }
 0x281   : > { %s704_s25 = scalar_lea.sflag [#allocation6], %s703_s21 }
 0x282   : > { %p955_p6 = pnand %p958_p12, %p1745_p8 }
 0x284   : > { %1236 = dma.done.wait (!%p955_p6), %s704_s25, 256  }
 0x285   : > { %1238 = vsyncadd (!%p955_p6), %s704_s25, 4294967040  ;;  %s24_s30 = sadd.s32 1, %s1289_s30   ;;  %s1747_s0 = sld [smem:[#allocation19_spill]] }
 0x286   : > { %p1655_p9 = scmp.ge.s32.totalorder %s24_s30, 6   ;;  %s1748_s2 = sld [smem:[#allocation18_spill]] }
 0x287   : > { %s1749_s24 = sld [smem:[#allocation14_spill]]  ;;  %s1750_s25 = sld [smem:[#allocation17_spill]] }
 0x288   : > { %s1751_s14 = sld [smem:[#allocation15_spill]]  ;;  %s1752_s10 = sld [smem:[#allocation16_spill]] }
 0x289   : > { %s1753_s18 = smov %s1245_s19  ;;  %s1754_s19 = smov %s1249_s20 }
 0x28a   : > { %s1756_s21 = smov %s1257_s22  ;;  %s1757_s22 = smov %s1261_s23 }
 0x28b   : > { %s1755_s20 = smov %s1747_s0  ;;  %s1759_s26 = smov %s1281_s28 }
 0x28c   : > { %s1758_s23 = smov %s1748_s2  ;;  %s1760_s27 = smov %s1285_s29 }
 0x28d   :  { %23 = sbr.rel (!%p1655_p9) target bundleno = 16 (0x10), region = 161 }
 0x28e   : > { %s1761_s28 = smov %s1751_s14  ;;  %s1762_s29 = smov %s1752_s10 }
 0x294   :  { %709 = vsyncpa [#allocation5], 1 }
 0x295   :  { %711 = vsyncpa [#allocation5 + $0x1], 1 }
 0x296   :  { %712 = vsyncpa [#allocation8], 1 }
 0x297   :  { %714 = vsyncpa [#allocation8 + $0x1], 1 }
 0x298   :  { %715 = vsyncpa [#allocation6], 1 }
 0x299   :  { %717 = vsyncpa [#allocation6 + $0x1], 1 }

</bundles_post_ra>
